<compile_context>
chip_gen: v7x
topology: tpu7x:2x2x1
jax: 0.10.0
libtpu: 0.0.40
codegen_flags: <defaults>
</compile_context>

<pallas_src>
import functools

import jax
import jax.numpy as jnp
from jax import lax
from jax.experimental import pallas as pl
from jax.experimental.pallas import tpu as pltpu

NUM = 128  # hard-coded block size from the PyTorch module (narrow(0, 0, 128))


def _nce_kernel(y_ref, o_ref, *, T):
    # y_ref: (256, D) — rows 0:128 are y1, rows 128:256 are y2.
    y_all = y_ref[...].astype(jnp.float32)           # (256, D)
    y1 = y_all[0:NUM, :]                              # (128, D)
    n = NUM

    # Fold temperature into the LHS operand (cheap 128xD VPU multiply).
    y1s = y1 * jnp.float32(1.0 / T)

    # One fused 128x256 MXU issue: S = (y1/T) @ y_all^T.
    #   S[:, 0:128]   = y1 @ y1^T / T   (s11)
    #   S[:, 128:256] = y1 @ y2^T / T   (s12)
    S = lax.dot_general(
        y1s, y_all,
        dimension_numbers=(((1,), (1,)), ((), ())),
        preferred_element_type=jnp.float32,
    )                                                  # (128, 256)
    s11 = S[:, 0:NUM]
    s12 = S[:, NUM:2 * NUM]

    # Shared diagonal mask (TPU needs >=2D iota).
    rows = lax.broadcasted_iota(jnp.int32, (n, n), 0)
    cols = lax.broadcasted_iota(jnp.int32, (n, n), 1)
    diag_mask = rows == cols

    # ---- positive term, log-sum-exp form -------------------------------
    # log(y4_ii) = s12_ii - [m_i + log(sum_j exp(s12_ij - m_i))]
    m12 = jnp.max(s12, axis=1, keepdims=True)          # (128, 1)
    e12 = jnp.exp(s12 - m12)
    lse12 = m12 + jnp.log(jnp.sum(e12, axis=1, keepdims=True))
    prob_p = jnp.sum(jnp.where(diag_mask, s12, 0.0)) - jnp.sum(lse12)

    # ---- negative term --------------------------------------------------
    # ratio_ij = exp(s11_ij - m_i) / sum_j exp(s11_ij - m_i)  (max cancels)
    m11 = jnp.max(s11, axis=1, keepdims=True)           # (128, 1)
    y6 = jnp.exp(s11 - m11)
    inv_s = pl.reciprocal(jnp.sum(y6, axis=1, keepdims=True), approx=False)
    y7 = jnp.log(1.0 - y6 * inv_s)
    # sum of off-diagonal entries only (single masked reduction; also avoids
    # the -inf - (-inf) NaN hazard of sum(y7) - sum(diag(y7))).
    prob_n = jnp.sum(jnp.where(diag_mask, 0.0, y7))

    loss = (-prob_p - prob_n) / jnp.float32(n)
    o_ref[0, 0] = loss


def nce_loss(y, T):
    """y: (N, D) with N >= 256. Returns scalar float32 loss."""
    y_in = y[0:2 * NUM, :]                              # single contiguous block
    out = pl.pallas_call(
        functools.partial(_nce_kernel, T=float(T)),
        out_shape=jax.ShapeDtypeStruct((1, 1), jnp.float32),
        in_specs=[pl.BlockSpec(memory_space=pltpu.VMEM)],
        out_specs=pl.BlockSpec(memory_space=pltpu.SMEM),
    )(y_in)
    return out[0, 0]


def _nce_loss_ref(y, T):
    """Pure-JAX reference mirroring the PyTorch forward exactly."""
    y1 = y[0:NUM, :].astype(jnp.float32)
    y2 = y[NUM:2 * NUM, :].astype(jnp.float32)
    num = y1.shape[0]
    y3 = jnp.exp(jnp.dot(y1, y2.T) / T)
    y4 = y3 / jnp.sum(y3, axis=1, keepdims=True)
    prob_p = jnp.sum(jnp.log(jnp.diag(y4)))
    y6 = jnp.exp(jnp.dot(y1, y1.T) / T)
    y7 = jnp.log(1.0 - y6 / jnp.sum(y6, axis=1, keepdims=True))
    y8 = jnp.sum(y7, axis=1) - jnp.diag(y7)
    prob_n = jnp.sum(y8)
    return (-prob_p - prob_n) / num


if __name__ == "__main__":
    key = jax.random.PRNGKey(0)
    D = 32       # feature / hidden dim (small)
    T = 0.07     # temperature

    # The module requires at least 256 rows (two 128-row blocks).
    y = jax.random.normal(key, (2 * NUM, D), dtype=jnp.float32)
    # L2-normalize rows (typical NCE embedding input); keeps exp() well-behaved.
    y = y / jnp.linalg.norm(y, axis=1, keepdims=True)

    loss = nce_loss(y, T)
    loss = jax.block_until_ready(loss)

    ref = jax.block_until_ready(_nce_loss_ref(y, T))
    assert jnp.allclose(loss, ref, rtol=1e-4, atol=1e-4), (loss, ref)

    print("KERNEL_OK")
</pallas_src>

<mosaic_0001>
module attributes {stable_mosaic.version = 11 : i64} {
  func.func @_nce_kernel(%arg0: memref<256x32xf32, #tpu.memory_space<vmem>>, %arg1: memref<1x1xf32, #tpu.memory_space<smem>>) attributes {dimension_semantics = [], scalar_prefetch = 0 : i64, scratch_operands = 0 : i64, tpu.core_type = #tpu.core_type<tc>} {
    %c0 = arith.constant 0 : index
    %c0_0 = arith.constant 0 : index
    %0 = vector.load %arg0[%c0, %c0_0] : memref<256x32xf32, #tpu.memory_space<vmem>>, vector<256x32xf32>
    %1 = vector.extract_strided_slice %0 {offsets = [0, 0], sizes = [128, 32], strides = [1, 1]} : vector<256x32xf32> to vector<128x32xf32>
    %cst = arith.constant 14.2857141 : f32
    %2 = vector.broadcast %cst : f32 to vector<128x32xf32>
    %3 = arith.mulf %1, %2 : vector<128x32xf32>
    %cst_1 = arith.constant dense<0.000000e+00> : vector<128x256xf32>
    %4 = tpu.matmul %3, %0, %cst_1 {dimension_numbers = #tpu.dot_dimension_numbers<[1], [1], [0], [0], [0, 0, 1, 0], [], []>} : vector<128x32xf32>, vector<256x32xf32>, vector<128x256xf32> -> vector<128x256xf32>
    %5 = vector.extract_strided_slice %4 {offsets = [0, 0], sizes = [128, 128], strides = [1, 1]} : vector<128x256xf32> to vector<128x128xf32>
    %6 = vector.extract_strided_slice %4 {offsets = [0, 128], sizes = [128, 128], strides = [1, 1]} : vector<128x256xf32> to vector<128x128xf32>
    %7 = tpu.iota {dimensions = array<i32: 0>} : vector<128x128xi32>
    %8 = tpu.iota {dimensions = array<i32: 1>} : vector<128x128xi32>
    %9 = arith.cmpi eq, %7, %8 : vector<128x128xi32>
    %cst_2 = arith.constant dense<0xFF800000> : vector<128xf32>
    %10 = vector.multi_reduction <maximumf>, %6, %cst_2 [1] : vector<128x128xf32> to vector<128xf32>
    %11 = vector.shape_cast %10 : vector<128xf32> to vector<128x1xf32>
    %12 = vector.broadcast %11 : vector<128x1xf32> to vector<128x128xf32>
    %13 = arith.subf %6, %12 : vector<128x128xf32>
    %14 = math.exp %13 : vector<128x128xf32>
    %cst_3 = arith.constant dense<0.000000e+00> : vector<128xf32>
    %15 = vector.multi_reduction <add>, %14, %cst_3 [1] : vector<128x128xf32> to vector<128xf32>
    %16 = vector.shape_cast %15 : vector<128xf32> to vector<128x1xf32>
    %17 = math.log %16 : vector<128x1xf32>
    %18 = arith.addf %11, %17 : vector<128x1xf32>
    %cst_4 = arith.constant 0.000000e+00 : f32
    %19 = vector.broadcast %cst_4 : f32 to vector<128x128xf32>
    %20 = arith.select %9, %6, %19 : vector<128x128xi1>, vector<128x128xf32>
    %21 = vector.shape_cast %20 : vector<128x128xf32> to vector<1x128x128xf32>
    %cst_5 = arith.constant dense<0.000000e+00> : vector<1xf32>
    %22 = vector.multi_reduction <add>, %21, %cst_5 [1, 2] : vector<1x128x128xf32> to vector<1xf32>
    %23 = vector.shape_cast %22 : vector<1xf32> to vector<1x1x1xf32>
    %24 = vector.extract %23[0, 0, 0] : f32 from vector<1x1x1xf32>
    %25 = vector.shape_cast %18 : vector<128x1xf32> to vector<1x128x1xf32>
    %cst_6 = arith.constant dense<0.000000e+00> : vector<1xf32>
    %26 = vector.multi_reduction <add>, %25, %cst_6 [1, 2] : vector<1x128x1xf32> to vector<1xf32>
    %27 = vector.shape_cast %26 : vector<1xf32> to vector<1x1x1xf32>
    %28 = vector.extract %27[0, 0, 0] : f32 from vector<1x1x1xf32>
    %29 = arith.subf %24, %28 : f32
    %cst_7 = arith.constant dense<0xFF800000> : vector<128xf32>
    %30 = vector.multi_reduction <maximumf>, %5, %cst_7 [1] : vector<128x128xf32> to vector<128xf32>
    %31 = vector.shape_cast %30 : vector<128xf32> to vector<128x1xf32>
    %32 = vector.broadcast %31 : vector<128x1xf32> to vector<128x128xf32>
    %33 = arith.subf %5, %32 : vector<128x128xf32>
    %34 = math.exp %33 : vector<128x128xf32>
    %cst_8 = arith.constant dense<0.000000e+00> : vector<128xf32>
    %35 = vector.multi_reduction <add>, %34, %cst_8 [1] : vector<128x128xf32> to vector<128xf32>
    %36 = vector.shape_cast %35 : vector<128xf32> to vector<128x1xf32>
    %37 = tpu.reciprocal %36 : vector<128x1xf32> -> vector<128x1xf32>
    %38 = vector.broadcast %37 : vector<128x1xf32> to vector<128x128xf32>
    %39 = arith.mulf %34, %38 : vector<128x128xf32>
    %cst_9 = arith.constant 1.000000e+00 : f32
    %40 = vector.broadcast %cst_9 : f32 to vector<128x128xf32>
    %41 = arith.subf %40, %39 : vector<128x128xf32>
    %42 = math.log %41 : vector<128x128xf32>
    %cst_10 = arith.constant 0.000000e+00 : f32
    %43 = vector.broadcast %cst_10 : f32 to vector<128x128xf32>
    %44 = arith.select %9, %43, %42 : vector<128x128xi1>, vector<128x128xf32>
    %45 = vector.shape_cast %44 : vector<128x128xf32> to vector<1x128x128xf32>
    %cst_11 = arith.constant dense<0.000000e+00> : vector<1xf32>
    %46 = vector.multi_reduction <add>, %45, %cst_11 [1, 2] : vector<1x128x128xf32> to vector<1xf32>
    %47 = vector.shape_cast %46 : vector<1xf32> to vector<1x1x1xf32>
    %48 = vector.extract %47[0, 0, 0] : f32 from vector<1x1x1xf32>
    %cst_12 = arith.constant 0.000000e+00 : f32
    %49 = arith.subf %cst_12, %29 : f32
    %50 = arith.subf %49, %48 : f32
    %cst_13 = arith.constant 1.280000e+02 : f32
    %51 = arith.divf %50, %cst_13 : f32
    %c0_14 = arith.constant 0 : index
    %c0_15 = arith.constant 0 : index
    %52 = memref.load %arg1[%c0_14, %c0_15] : memref<1x1xf32, #tpu.memory_space<smem>>
    memref.store %51, %arg1[%c0_14, %c0_15] : memref<1x1xf32, #tpu.memory_space<smem>>
    return
  }
}

</mosaic_0001>

<bundles_post_ra>
// kernel: tpu_custom_call.1
= control target key start
LH: loop header
LB: loop body
LE: loop exit
PB: predicated region body
PF: predicated region fallthrough
CT: control target
= control target key end

     0   :  { %vm57_vm0 = vcmask 261120   ;;  %s1972_s0 = inlined_call_operand.vmem [shape: f32[256,32], index: 0, kind: input, shape index: {}]   ;;  %s1973_s1 = inlined_call_operand.hbm [shape: f32[1,1], index: 1, kind: output, shape index: {}]  }
   0x1   :  { %v25_v0 = vld [vmem:[%s1972_s0 + $0x80] sm:$0xff]  ;;  %v26_v1 = vld [vmem:[%s1972_s0 + $0x88] sm:$0xff]  ;;  %vm1269_vm1 = vmpackc.low %vm57_vm0, %vm57_vm0 }
   0x2   :  { %v9_v2 = vld [vmem:[%s1972_s0] sm:$0xff]  ;;  %v1004_v3 = vpack.c.bf16 %v26_v1, %v25_v0  ;;  %v1276_v5 = vld [vmem:[%s1972_s0 + $0x8] sm:$0xff]  ;;  %v27_v6 = vld [vmem:[%s1972_s0 + $0x90] sm:$0xff] }
   0x3   :  { %v1007_v7 = vpack.c.bf16 %v1276_v5, %v9_v2  ;;  %v28_v8 = vld [vmem:[%s1972_s0 + $0x98] sm:$0xff]  ;;  %v1285_v9 = vmul.f32 14.285714, %v9_v2  ;;  %v1300_v11 = vld [vmem:[%s1972_s0 + $0x10] sm:$0xff]  ;;  %v29_v13 = vld [vmem:[%s1972_s0 + $0xa0] sm:$0xff] }
   0x4   :  { %1006 = vmatprep.subr.msk.bf16.mxu0 %vm1269_vm1, %v1004_v3  ;;  %1052 = vmatprep.subr.msk.bf16.mxu1 %vm1269_vm1, %v1004_v3  ;;  %v1010_v10 = vpack.c.bf16 %v28_v8, %v27_v6  ;;  %v1305_v12 = vld [vmem:[%s1972_s0 + $0x18] sm:$0xff]  ;;  %v30_v14 = vld [vmem:[%s1972_s0 + $0xa8] sm:$0xff]  ;;  %v17_v15 = vld [vmem:[%s1972_s0 + $0x40] sm:$0xff] }
   0x5   :  { %1009 = vmatpush3.bf16.xpose.msk.msra.mxu0 %vm1269_vm1, %v1007_v7  ;;  %1060 = vmatpush3.bf16.xpose.msk.msra.mxu1 %vm1269_vm1, %v1007_v7  ;;  %v1320_v16 = vmul.f32 14.285714, %v17_v15  ;;  %v1013_v17 = vpack.c.bf16 %v1305_v12, %v1300_v11  ;;  %v1016_v18 = vpack.c.bf16 %v30_v14, %v29_v13 }
   0x6   :  { %1012 = vmatprep.subr.msk.bf16.mxu0 %vm1269_vm1, %v1010_v10  ;;  %1053 = vmatprep.subr.msk.bf16.mxu1 %vm1269_vm1, %v1010_v10 }
   0x7   :  { %972 = vmatprep.mubr.msk.f32.mxu0 %vm57_vm0, %v1285_v9  ;;  %988 = vmatprep.mubr.msk.f32.mxu1 %vm57_vm0, %v1320_v16 }
   0x8   :  { %6 = vsyncpa [#allocation3], 0  ;;  %v1335_v19 = vld [vmem:[%s1972_s0 + $0x20] sm:$0xff]  ;;  %v1340_v20 = vld [vmem:[%s1972_s0 + $0x28] sm:$0xff]  ;;  %v42_v51 = vmul.f32 14.285714, %v1276_v5  ;;  %v363_v1 = vlaneseq }
   0x9   :  { %v31_v21 = vld [vmem:[%s1972_s0 + $0xb0] sm:$0xff]  ;;  %v32_v22 = vld [vmem:[%s1972_s0 + $0xb8] sm:$0xff]  ;;  %v1019_v23 = vpack.c.bf16 %v1340_v20, %v1335_v19  ;;  %v33_v27 = vld [vmem:[%s1972_s0 + $0xc0] sm:$0xff]  ;;  %v43_v53 = vmul.f32 14.285714, %v1300_v11  ;;  %s1235_s20 = scalar_lea.hbm %s1973_s1, 16 }
   0xa   :  { %v1022_v24 = vpack.c.bf16 %v32_v22, %v31_v21  ;;  %v1361_v25 = vld [vmem:[%s1972_s0 + $0x30] sm:$0xff]  ;;  %v1366_v26 = vld [vmem:[%s1972_s0 + $0x38] sm:$0xff]  ;;  %v34_v28 = vld [vmem:[%s1972_s0 + $0xc8] sm:$0xff]  ;;  %v44_v55 = vmul.f32 14.285714, %v1305_v12  ;;  %v1492_v2 = vshrl.u32 %v363_v1, 7  ;;  %p1236_p0 = scmp.ne.s32.totalorder %s1973_s1, %s1235_s20  ;;  %p1239_p1 = scmp.lt.u32.totalorder %s1235_s20, %s1973_s1 }
   0xb   :  { %v1025_v29 = vpack.c.bf16 %v1366_v26, %v1361_v25  ;;  %v1028_v30 = vpack.c.bf16 %v34_v28, %v33_v27  ;;  %v18_v31 = vld [vmem:[%s1972_s0 + $0x48] sm:$0xff]  ;;  %v35_v32 = vld [vmem:[%s1972_s0 + $0xd0] sm:$0xff]  ;;  %v36_v33 = vld [vmem:[%s1972_s0 + $0xd8] sm:$0xff]  ;;  %v45_v57 = vmul.f32 14.285714, %v1335_v19  ;;  %v1494_v3 = vand.u32 127, %v363_v1 }
   0xc   :  { %v1031_v34 = vpack.c.bf16 %v18_v31, %v17_v15  ;;  %v1034_v35 = vpack.c.bf16 %v36_v33, %v35_v32  ;;  %v19_v36 = vld [vmem:[%s1972_s0 + $0x50] sm:$0xff]  ;;  %v20_v37 = vld [vmem:[%s1972_s0 + $0x58] sm:$0xff]  ;;  %v37_v38 = vld [vmem:[%s1972_s0 + $0xe0] sm:$0xff]  ;;  %v50_v52 = vmul.f32 14.285714, %v18_v31  ;;  %v1497_v4 = vadd.s32 8, %v1492_v2  ;;  %p1241_p2 = pnand %p1239_p1, %p1236_p0 }
   0xd   :  { %1015 = vmatpush3.bf16.xpose.msk.msra.mxu0 %vm1269_vm1, %v1013_v17  ;;  %1061 = vmatpush3.bf16.xpose.msk.msra.mxu1 %vm1269_vm1, %v1013_v17  ;;  %v38_v39 = vld [vmem:[%s1972_s0 + $0xe8] sm:$0xff]  ;;  %v1037_v40 = vpack.c.bf16 %v20_v37, %v19_v36  ;;  %v21_v42 = vld [vmem:[%s1972_s0 + $0x60] sm:$0xff]  ;;  %v39_v44 = vld [vmem:[%s1972_s0 + $0xf0] sm:$0xff]  ;;  %v51_v54 = vmul.f32 14.285714, %v19_v36  ;;  %vm382_vm2 = vcmp.eq.s32.totalorder %v1492_v2, %v1494_v3  ;;  %v1536_v17 = vadd.s32 24, %v1492_v2 }
   0xe   :  { %1018 = vmatprep.subr.msk.bf16.mxu0 %vm1269_vm1, %v1016_v18  ;;  %1054 = vmatprep.subr.msk.bf16.mxu1 %vm1269_vm1, %v1016_v18  ;;  %v1040_v41 = vpack.c.bf16 %v38_v39, %v37_v38  ;;  %v22_v43 = vld [vmem:[%s1972_s0 + $0x68] sm:$0xff]  ;;  %v40_v45 = vld [vmem:[%s1972_s0 + $0xf8] sm:$0xff]  ;;  %v23_v48 = vld [vmem:[%s1972_s0 + $0x70] sm:$0xff]  ;;  %v52_v56 = vmul.f32 14.285714, %v20_v37  ;;  %vm383_vm3 = vcmp.eq.s32.totalorder %v1497_v4, %v1494_v3  ;;  %v1574_v31 = vadd.s32 40, %v1492_v2 }
   0xf   :  { %v1043_v46 = vpack.c.bf16 %v22_v43, %v21_v42  ;;  %v1046_v47 = vpack.c.bf16 %v40_v45, %v39_v44  ;;  %v24_v49 = vld [vmem:[%s1972_s0 + $0x78] sm:$0xff]  ;;  %v53_v58 = vmul.f32 14.285714, %v21_v42  ;;  %v46_v59 = vmul.f32 14.285714, %v1340_v20 }
  0x10   :  { %v1049_v50 = vpack.c.bf16 %v24_v49, %v23_v48  ;;  %v54_v60 = vmul.f32 14.285714, %v22_v43  ;;  %v47_v61 = vmul.f32 14.285714, %v1361_v25  ;;  %v55_v62 = vmul.f32 14.285714, %v23_v48 }
  0x11   :  { %v48_v63 = vmul.f32 14.285714, %v1366_v26  ;;  %v56_v0 = vmul.f32 14.285714, %v24_v49  ;;  %vm385_vm5 = vcmp.eq.s32.totalorder %v1536_v17, %v1494_v3  ;;  %vm387_vm7 = vcmp.eq.s32.totalorder %v1574_v31, %v1494_v3 }
  0x12   :  { %v1593_v38 = vadd.s32 48, %v1492_v2  ;;  %v1612_v45 = vadd.s32 56, %v1492_v2  ;;  %v1619_v48 = vadd.s32 64, %v1492_v2  ;;  %v1671_v1 = vadd.s32 104, %v1492_v2 }
  0x14   :  { %vm388_vm8 = vcmp.eq.s32.totalorder %v1593_v38, %v1494_v3  ;;  %vm389_vm9 = vcmp.eq.s32.totalorder %v1612_v45, %v1494_v3  ;;  %vm390_vm10 = vcmp.eq.s32.totalorder %v1619_v48, %v1494_v3  ;;  %vm395_vm15 = vcmp.eq.s32.totalorder %v1671_v1, %v1494_v3 }
  0x15   :  { %1021 = vmatpush3.bf16.xpose.msk.msra.mxu0 %vm1269_vm1, %v1019_v23  ;;  %1062 = vmatpush3.bf16.xpose.msk.msra.mxu1 %vm1269_vm1, %v1019_v23 }
  0x16   :  { %1024 = vmatprep.subr.msk.bf16.mxu0 %vm1269_vm1, %v1022_v24  ;;  %1055 = vmatprep.subr.msk.bf16.mxu1 %vm1269_vm1, %v1022_v24  ;;  %v1555_v24 = vadd.s32 32, %v1492_v2 }
  0x18   :  { %vm386_vm6 = vcmp.eq.s32.totalorder %v1555_v24, %v1494_v3 }
  0x1d   :  { %1027 = vmatpush3.bf16.xpose.msk.msra.mxu0 %vm1269_vm1, %v1025_v29  ;;  %1063 = vmatpush3.bf16.xpose.msk.msra.mxu1 %vm1269_vm1, %v1025_v29 }
  0x1e   :  { %1030 = vmatprep.subr.msk.bf16.mxu0 %vm1269_vm1, %v1028_v30  ;;  %1056 = vmatprep.subr.msk.bf16.mxu1 %vm1269_vm1, %v1028_v30 }
  0x25   :  { %1033 = vmatpush3.bf16.xpose.msk.msra.mxu0 %vm1269_vm1, %v1031_v34  ;;  %1064 = vmatpush3.bf16.xpose.msk.msra.mxu1 %vm1269_vm1, %v1031_v34 }
  0x26   :  { %1036 = vmatprep.subr.msk.bf16.mxu0 %vm1269_vm1, %v1034_v35  ;;  %1057 = vmatprep.subr.msk.bf16.mxu1 %vm1269_vm1, %v1034_v35 }
  0x2d   :  { %1039 = vmatpush3.bf16.xpose.msk.msra.mxu0 %vm1269_vm1, %v1037_v40  ;;  %1065 = vmatpush3.bf16.xpose.msk.msra.mxu1 %vm1269_vm1, %v1037_v40 }
  0x2e   :  { %1042 = vmatprep.subr.msk.bf16.mxu0 %vm1269_vm1, %v1040_v41  ;;  %1058 = vmatprep.subr.msk.bf16.mxu1 %vm1269_vm1, %v1040_v41 }
  0x35   :  { %1045 = vmatpush3.bf16.xpose.msk.msra.mxu0 %vm1269_vm1, %v1043_v46  ;;  %1066 = vmatpush3.bf16.xpose.msk.msra.mxu1 %vm1269_vm1, %v1043_v46 }
  0x36   :  { %1048 = vmatprep.subr.msk.bf16.mxu0 %vm1269_vm1, %v1046_v47  ;;  %1059 = vmatprep.subr.msk.bf16.mxu1 %vm1269_vm1, %v1046_v47 }
  0x3d   :  { %1051 = vmatpush3.bf16.xpose.msk.msra.mxu0 %vm1269_vm1, %v1049_v50  ;;  %1067 = vmatpush3.bf16.xpose.msk.msra.mxu1 %vm1269_vm1, %v1049_v50 }
  0x44   :  { %973 = vmatmul.mubr.msk.f32.vlgmr.msra.gmra.mrb[0].mxu0 %vm57_vm0, %v1285_v9  ;;  %989 = vmatmul.mubr.msk.f32.vlgmr.msra.gmra.mrb[0].mxu1 %vm57_vm0, %v1320_v16  ;;  %v1513_v9 = vadd.s32 16, %v1492_v2 }
  0x45   :  { %974 = vmatprep.mubr.msk.f32.mxu0 %vm57_vm0, %v42_v51  ;;  %990 = vmatprep.mubr.msk.f32.mxu1 %vm57_vm0, %v50_v52 }
  0x46   :  { %vm384_vm4 = vcmp.eq.s32.totalorder %v1513_v9, %v1494_v3 }
  0x48   :  { %975 = vmatmul.mubr.msk.f32.gmra.mrb[2].mxu0 %vm57_vm0, %v42_v51  ;;  %991 = vmatmul.mubr.msk.f32.gmra.mrb[2].mxu1 %vm57_vm0, %v50_v52  ;;  %v1632_v52 = vadd.s32 72, %v1492_v2 }
  0x49   :  { %976 = vmatprep.mubr.msk.f32.mxu0 %vm57_vm0, %v43_v53  ;;  %992 = vmatprep.mubr.msk.f32.mxu1 %vm57_vm0, %v51_v54 }
  0x4a   :  { %vm391_vm11 = vcmp.eq.s32.totalorder %v1632_v52, %v1494_v3 }
  0x4c   :  { %977 = vmatmul.mubr.msk.f32.gmra.mrb[4].mxu0 %vm57_vm0, %v43_v53  ;;  %993 = vmatmul.mubr.msk.f32.gmra.mrb[4].mxu1 %vm57_vm0, %v51_v54 }
  0x4d   :  { %978 = vmatprep.mubr.msk.f32.mxu0 %vm57_vm0, %v44_v55  ;;  %994 = vmatprep.mubr.msk.f32.mxu1 %vm57_vm0, %v52_v56 }
  0x50   :  { %979 = vmatmul.mubr.msk.f32.gmra.mrb[6].mxu0 %vm57_vm0, %v44_v55  ;;  %995 = vmatmul.mubr.msk.f32.gmra.mrb[6].mxu1 %vm57_vm0, %v52_v56  ;;  %v1643_v56 = vadd.s32 80, %v1492_v2 }
  0x51   :  { %980 = vmatprep.mubr.msk.f32.mxu0 %vm57_vm0, %v45_v57  ;;  %996 = vmatprep.mubr.msk.f32.mxu1 %vm57_vm0, %v53_v58 }
  0x52   :  { %vm392_vm12 = vcmp.eq.s32.totalorder %v1643_v56, %v1494_v3 }
  0x54   :  { %981 = vmatmul.mubr.msk.f32.gmra.mrb[8].mxu0 %vm57_vm0, %v45_v57  ;;  %997 = vmatmul.mubr.msk.f32.gmra.mrb[8].mxu1 %vm57_vm0, %v53_v58 }
  0x55   :  { %982 = vmatprep.mubr.msk.f32.mxu0 %vm57_vm0, %v46_v59  ;;  %998 = vmatprep.mubr.msk.f32.mxu1 %vm57_vm0, %v54_v60 }
  0x58   :  { %983 = vmatmul.mubr.msk.f32.gmra.mrb[10].mxu0 %vm57_vm0, %v46_v59  ;;  %999 = vmatmul.mubr.msk.f32.gmra.mrb[10].mxu1 %vm57_vm0, %v54_v60 }
  0x59   :  { %984 = vmatprep.mubr.msk.f32.mxu0 %vm57_vm0, %v47_v61  ;;  %1000 = vmatprep.mubr.msk.f32.mxu1 %vm57_vm0, %v55_v62 }
  0x5c   :  { %985 = vmatmul.mubr.msk.f32.gmra.mrb[12].mxu0 %vm57_vm0, %v47_v61  ;;  %1001 = vmatmul.mubr.msk.f32.gmra.mrb[12].mxu1 %vm57_vm0, %v55_v62  ;;  %v1658_v61 = vadd.s32 88, %v1492_v2  ;;  %v1661_v62 = vadd.s32 96, %v1492_v2 }
  0x5d   :  { %986 = vmatprep.mubr.msk.f32.mxu0 %vm57_vm0, %v48_v63  ;;  %1002 = vmatprep.mubr.msk.f32.mxu1 %vm57_vm0, %v56_v0 }
  0x5e   :  { %vm393_vm13 = vcmp.eq.s32.totalorder %v1658_v61, %v1494_v3  ;;  %vm394_vm14 = vcmp.eq.s32.totalorder %v1661_v62, %v1494_v3 }
  0x60   :  { %987 = vmatmul.mubr.msk.f32.gmra.mrb[14].mxu0 %vm57_vm0, %v48_v63  ;;  %1003 = vmatmul.mubr.msk.f32.gmra.mrb[14].mxu1 %vm57_vm0, %v56_v0 }
 0x117   :  { %v1499_v5 = vpop.f32.mrb[0].mxu0  ;;  %v1501_v6 = vpop.f32.mrb[0].mxu1 }
 0x118   :  { %640 = vmax.xlane.f32.xlu0 %v1499_v5  ;;  %v1504_v7 = vpop.f32.mrb[1].mxu0  ;;  %v1506_v8 = vpop.f32.mrb[1].mxu1 }
 0x119   :  { %v558_v14 = vsel %vm382_vm2, %v1504_v7, 0.0  ;;  %v566_v63 = vsel %vm390_vm10, %v1506_v8, 0.0 }
 0x11b   :  { %v1515_v10 = vpop.f32.mrb[2].mxu0  ;;  %v1517_v11 = vpop.f32.mrb[2].mxu1 }
 0x11c   :  { %656 = vmax.xlane.f32.xlu0 %v1501_v6  ;;  %v1520_v12 = vpop.f32.mrb[3].mxu0  ;;  %v1522_v13 = vpop.f32.mrb[3].mxu1 }
 0x11d   :  { %v559_v15 = vsel %vm383_vm3, %v1520_v12, 0.0  ;;  %400 = vmax.xlane.f32.xlu1 %v1520_v12 }
 0x11e   :  { %v574_v16 = vadd.f32 %v559_v15, %v558_v14  ;;  %v567_v14 = vsel %vm391_vm11, %v1522_v13, 0.0 }
 0x11f   :  { %v1538_v18 = vpop.f32.mrb[4].mxu0  ;;  %v1540_v19 = vpop.f32.mrb[4].mxu1 }
 0x120   :  { %398 = vmax.xlane.f32.xlu0 %v1504_v7  ;;  %v1543_v20 = vpop.f32.mrb[5].mxu0  ;;  %v1545_v21 = vpop.f32.mrb[5].mxu1 }
 0x121   :  { %v560_v22 = vsel %vm384_vm4, %v1543_v20, 0.0  ;;  %644 = vmax.xlane.f32.xlu1 %v1538_v18 }
 0x122   :  { %v575_v23 = vadd.f32 %v574_v16, %v560_v22  ;;  %v1683_v16 = vadd.s32 112, %v1492_v2  ;;  %v568_v22 = vsel %vm392_vm12, %v1545_v21, 0.0 }
 0x123   :  { %v1557_v25 = vpop.f32.mrb[6].mxu0  ;;  %v1559_v26 = vpop.f32.mrb[6].mxu1 }
 0x124   :  { %642 = vmax.xlane.f32.xlu0 %v1515_v10  ;;  %v1562_v27 = vpop.f32.mrb[7].mxu0  ;;  %v1564_v28 = vpop.f32.mrb[7].mxu1  ;;  %vm396_vm0 = vcmp.eq.s32.totalorder %v1683_v16, %v1494_v3 }
 0x125   :  { %v561_v29 = vsel %vm385_vm5, %v1562_v27, 0.0  ;;  %402 = vmax.xlane.f32.xlu1 %v1543_v20 }
 0x126   :  { %v576_v30 = vadd.f32 %v575_v23, %v561_v29  ;;  %v1693_v29 = vadd.s32 120, %v1492_v2 }
 0x127   :  { %v1576_v32 = vpop.f32.mrb[8].mxu0  ;;  %v1578_v33 = vpop.f32.mrb[8].mxu1 }
 0x128   :  { %658 = vmax.xlane.f32.xlu0 %v1517_v11  ;;  %v1581_v34 = vpop.f32.mrb[9].mxu0  ;;  %v1583_v35 = vpop.f32.mrb[9].mxu1  ;;  %1979 = vst [vmem:[#allocation5_spill] sm:$0xff] %v1693_v29  ;;  %vm1976_vm1 = vcmp.eq.s32.totalorder %v1693_v29, %v1494_v3 }
 0x129   :  { %v562_v36 = vsel %vm386_vm6, %v1581_v34, 0.0  ;;  %646 = vmax.xlane.f32.xlu1 %v1557_v25 }
 0x12a   :  { %v577_v37 = vadd.f32 %v576_v30, %v562_v36  ;;  %v569_v30 = vsel %vm393_vm13, %v1564_v28, 0.0  ;;  %v570_v36 = vsel %vm394_vm14, %v1583_v35, 0.0 }
 0x12b   :  { %v1595_v39 = vpop.f32.mrb[10].mxu0  ;;  %v1597_v40 = vpop.f32.mrb[10].mxu1 }
 0x12c   :  { %660 = vmax.xlane.f32.xlu0 %v1540_v19  ;;  %v1600_v41 = vpop.f32.mrb[11].mxu0  ;;  %v1602_v42 = vpop.f32.mrb[11].mxu1 }
 0x12d   :  { %v563_v43 = vsel %vm387_vm7, %v1600_v41, 0.0  ;;  %404 = vmax.xlane.f32.xlu1 %v1562_v27 }
 0x12e   :  { %v578_v44 = vadd.f32 %v577_v37, %v563_v43  ;;  %v571_v43 = vsel %vm395_vm15, %v1602_v42, 0.0 }
 0x12f   :  { %v1614_v46 = vpop.f32.mrb[12].mxu0  ;;  %v1616_v47 = vpop.f32.mrb[12].mxu1 }
 0x130   :  { %662 = vmax.xlane.f32.xlu0 %v1559_v26  ;;  %v1622_v49 = vpop.f32.mrb[13].mxu0  ;;  %v1624_v50 = vpop.f32.mrb[13].mxu1 }
 0x131   :  { %v564_v51 = vsel %vm388_vm8, %v1622_v49, 0.0  ;;  %406 = vmax.xlane.f32.xlu1 %v1581_v34 }
 0x132   :  { %v579_v53 = vadd.f32 %v578_v44, %v564_v51  ;;  %v572_v51 = vsel %vm396_vm0, %v1624_v50, 0.0 }
 0x133   :  { %v1636_v54 = vpop.f32.mrb[14].mxu0  ;;  %v1638_v55 = vpop.f32.mrb[14].mxu1 }
 0x134   :  { %648 = vmax.xlane.f32.xlu0 %v1576_v32  ;;  %v1646_v57 = vpop.f32.mrb[15].mxu0  ;;  %v1648_v58 = vpop.f32.mrb[15].mxu1 }
 0x135   :  { %v565_v59 = vsel %vm389_vm9, %v1646_v57, 0.0  ;;  %650 = vmax.xlane.f32.xlu1 %v1595_v39 }
 0x136   :  { %v580_v60 = vadd.f32 %v579_v53, %v565_v59  ;;  %v573_v59 = vsel %vm1976_vm1, %v1648_v58, 0.0  ;;  %vm598_vm1 = vcmask 7168  }
 0x138   :  { %v581_v0 = vadd.f32 %v580_v60, %v566_v63  ;;  %652 = vmax.xlane.f32.xlu0 %v1614_v46 }
 0x139   :  { %408 = vmax.xlane.f32.xlu1 %v1600_v41 }
 0x13a   :  { %v582_v15 = vadd.f32 %v581_v0, %v567_v14 }
 0x13c   :  { %v583_v23 = vadd.f32 %v582_v15, %v568_v22  ;;  %654 = vmax.xlane.f32.xlu0 %v1636_v54 }
 0x13d   :  { %410 = vmax.xlane.f32.xlu1 %v1622_v49 }
 0x13e   :  { %v584_v37 = vadd.f32 %v583_v23, %v569_v30 }
 0x140   :  { %v585_v44 = vadd.f32 %v584_v37, %v570_v36  ;;  %664 = vmax.xlane.f32.xlu0 %v1578_v33 }
 0x141   :  { %414 = vmax.xlane.f32.xlu1 %v1506_v8 }
 0x142   :  { %v586_v53 = vadd.f32 %v585_v44, %v571_v43 }
 0x144   :  { %666 = vmax.xlane.f32.xlu0 %v1597_v40  ;;  %v587_v60 = vadd.f32 %v586_v53, %v572_v51 }
 0x145   :  { %416 = vmax.xlane.f32.xlu1 %v1522_v13 }
 0x146   :  { %v1724_v63 = vadd.f32 %v587_v60, %v573_v59 }
 0x148   :  { %668 = vmax.xlane.f32.xlu0 %v1616_v47 }
 0x149   :  { %412 = vmax.xlane.f32.xlu1 %v1646_v57 }
 0x14c   :  { %670 = vmax.xlane.f32.xlu0 %v1638_v55 }
 0x14d   :  { %418 = vmax.xlane.f32.xlu1 %v1545_v21 }
 0x150   :  { %422 = vmax.xlane.f32.xlu0 %v1583_v35 }
 0x151   :  { %420 = vmax.xlane.f32.xlu1 %v1564_v28 }
 0x154   :  { %426 = vmax.xlane.f32.xlu0 %v1624_v50 }
 0x155   :  { %424 = vmax.xlane.f32.xlu1 %v1602_v42 }
 0x159   :  { %428 = vmax.xlane.f32.xlu1 %v1648_v58 }
 0x1a5   :  { %v641_v0 = vpop.xlane.xlu0 %640 }
 0x1a6   :  { %v672_v14 = vsub.f32 %v1499_v5, %v641_v0 }
 0x1a8   :  { %v688_v15 = vmul.f32 1.442695, %v672_v14 }
 0x1a9   :  { %v657_v22 = vpop.xlane.xlu0 %656 }
 0x1aa   :  { %1075 = vpow2.f32 %v688_v15  ;;  %v680_v23 = vsub.f32 %v1501_v6, %v657_v22  ;;  %v1737_v30 = vpop.xlane.xlu1 %400 }
 0x1ab   :  { %v431_v53 = vsub.f32 %v1520_v12, %v1737_v30 }
 0x1ac   :  { %v704_v36 = vmul.f32 1.442695, %v680_v23 }
 0x1ad   :  { %v1739_v37 = vpop.xlane.xlu0 %398  ;;  %v448_v14 = vmul.f32 1.442695, %v431_v53 }
 0x1ae   :  { %1077 = vpow2.f32 %v704_v36  ;;  %v430_v43 = vsub.f32 %v1504_v7, %v1739_v37  ;;  %v645_v44 = vpop.xlane.xlu1 %644 }
 0x1af   :  { %v674_v15 = vsub.f32 %v1538_v18, %v645_v44 }
 0x1b0   :  { %v446_v51 = vmul.f32 1.442695, %v430_v43 }
 0x1b1   :  { %v643_v5 = vpop.xlane.xlu0 %642  ;;  %v692_v43 = vmul.f32 1.442695, %v674_v15 }
 0x1b2   :  { %1079 = vpow2.f32 %v446_v51  ;;  %v673_v59 = vsub.f32 %v1515_v10, %v643_v5  ;;  %v1746_v60 = vpop.xlane.xlu1 %402 }
 0x1b3   :  { %v432_v7 = vsub.f32 %v1543_v20, %v1746_v60 }
 0x1b4   :  { %v1748_v6 = vpop.eup %1075  ;;  %v690_v0 = vmul.f32 1.442695, %v673_v59 }
 0x1b5   :  { %v659_v22 = vpop.xlane.xlu0 %658  ;;  %720 = vadd.xlane.f32.xlu0 %v1748_v6  ;;  %v450_v18 = vmul.f32 1.442695, %v432_v7 }
 0x1b6   :  { %1081 = vpow2.f32 %v690_v0  ;;  %v681_v12 = vsub.f32 %v1517_v11, %v659_v22  ;;  %v647_v23 = vpop.xlane.xlu1 %646 }
 0x1b7   :  { %1083 = vpow2.f32 %v448_v14  ;;  %v675_v51 = vsub.f32 %v1557_v25, %v647_v23 }
 0x1b8   :  { %v1755_v36 = vpop.eup %1077  ;;  %v706_v10 = vmul.f32 1.442695, %v681_v12 }
 0x1b9   :  { %v661_v53 = vpop.xlane.xlu0 %660  ;;  %736 = vadd.xlane.f32.xlu0 %v1755_v36  ;;  %v694_v11 = vmul.f32 1.442695, %v675_v51 }
 0x1ba   :  { %1085 = vpow2.f32 %v706_v10  ;;  %v682_v44 = vsub.f32 %v1540_v19, %v661_v53  ;;  %v1760_v5 = vpop.xlane.xlu1 %404 }
 0x1bb   :  { %1087 = vpow2.f32 %v692_v43  ;;  %v433_v59 = vsub.f32 %v1562_v27, %v1760_v5 }
 0x1bc   :  { %v1080_v20 = vpop.eup %1079  ;;  %1089 = vpow2.f32 %v450_v18  ;;  %v708_v14 = vmul.f32 1.442695, %v682_v44 }
 0x1bd   :  { %v663_v0 = vpop.xlane.xlu0 %662  ;;  %478 = vadd.xlane.f32.xlu0 %v1080_v20  ;;  %1091 = vpow2.f32 %v694_v11  ;;  %v452_v19 = vmul.f32 1.442695, %v433_v59 }
 0x1be   :  { %v683_v25 = vsub.f32 %v1559_v26, %v663_v0  ;;  %v1765_v15 = vpop.xlane.xlu1 %406  ;;  %1093 = vpow2.f32 %v708_v14 }
 0x1bf   :  { %v434_v7 = vsub.f32 %v1581_v34, %v1765_v15  ;;  %1095 = vpow2.f32 %v452_v19 }
 0x1c0   :  { %v1767_v22 = vpop.eup %1081  ;;  %v710_v27 = vmul.f32 1.442695, %v683_v25 }
 0x1c1   :  { %v649_v12 = vpop.xlane.xlu0 %648  ;;  %722 = vadd.xlane.f32.xlu1 %v1767_v22  ;;  %v1084_v43 = vpop.eup %1083  ;;  %v454_v26 = vmul.f32 1.442695, %v434_v7 }
 0x1c2   :  { %v676_v23 = vsub.f32 %v1576_v32, %v649_v12  ;;  %v651_v10 = vpop.xlane.xlu1 %650  ;;  %1097 = vpow2.f32 %v710_v27 }
 0x1c3   :  { %v677_v53 = vsub.f32 %v1595_v39, %v651_v10  ;;  %1099 = vpow2.f32 %v454_v26 }
 0x1c4   :  { %v1773_v51 = vpop.eup %1085  ;;  %v696_v34 = vmul.f32 1.442695, %v676_v23 }
 0x1c5   :  { %v653_v18 = vpop.xlane.xlu0 %652  ;;  %738 = vadd.xlane.f32.xlu0 %v1773_v51  ;;  %480 = vadd.xlane.f32.xlu1 %v1084_v43  ;;  %v1780_v11 = vpop.eup %1087  ;;  %v698_v59 = vmul.f32 1.442695, %v677_v53 }
 0x1c6   :  { %v678_v44 = vsub.f32 %v1614_v46, %v653_v18  ;;  %v1778_v20 = vpop.xlane.xlu1 %408  ;;  %v1090_v32 = vpop.eup %1089  ;;  %1101 = vpow2.f32 %v696_v34 }
 0x1c7   :  { %v435_v0 = vsub.f32 %v1600_v41, %v1778_v20  ;;  %v1788_v46 = vpop.eup %1091  ;;  %1103 = vpow2.f32 %v698_v59 }
 0x1c8   :  { %v700_v14 = vmul.f32 1.442695, %v678_v44  ;;  %v1790_v7 = vpop.eup %1093 }
 0x1c9   :  { %724 = vadd.xlane.f32.xlu0 %v1780_v11  ;;  %v655_v39 = vpop.xlane.xlu0 %654  ;;  %482 = vadd.xlane.f32.xlu1 %v1090_v32  ;;  %v456_v12 = vmul.f32 1.442695, %v435_v0  ;;  %v1096_v43 = vpop.eup %1095 }
 0x1ca   :  { %v679_v25 = vsub.f32 %v1636_v54, %v655_v39  ;;  %v1786_v19 = vpop.xlane.xlu1 %410  ;;  %1105 = vpow2.f32 %v700_v14 }
 0x1cb   :  { %v436_v27 = vsub.f32 %v1622_v49, %v1786_v19  ;;  %1107 = vpow2.f32 %v456_v12 }
 0x1cc   :  { %v702_v23 = vmul.f32 1.442695, %v679_v25  ;;  %v1799_v26 = vpop.eup %1097 }
 0x1cd   :  { %740 = vadd.xlane.f32.xlu0 %v1790_v7  ;;  %v665_v41 = vpop.xlane.xlu0 %664  ;;  %726 = vadd.xlane.f32.xlu1 %v1788_v46  ;;  %v458_v53 = vmul.f32 1.442695, %v436_v27 }
 0x1ce   :  { %v684_v54 = vsub.f32 %v1578_v33, %v665_v41  ;;  %v1797_v10 = vpop.xlane.xlu1 %414  ;;  %1109 = vpow2.f32 %v702_v23  ;;  %v1100_v33 = vpop.eup %1099 }
 0x1cf   :  { %v438_v18 = vsub.f32 %v1506_v8, %v1797_v10  ;;  %1111 = vpow2.f32 %v458_v53 }
 0x1d0   :  { %v712_v34 = vmul.f32 1.442695, %v684_v54  ;;  %v1807_v59 = vpop.eup %1101 }
 0x1d1   :  { %742 = vadd.xlane.f32.xlu0 %v1799_v26  ;;  %v667_v49 = vpop.xlane.xlu0 %666  ;;  %484 = vadd.xlane.f32.xlu1 %v1096_v43  ;;  %v462_v0 = vmul.f32 1.442695, %v438_v18 }
 0x1d2   :  { %v685_v44 = vsub.f32 %v1597_v40, %v667_v49  ;;  %v1805_v32 = vpop.xlane.xlu1 %416  ;;  %1113 = vpow2.f32 %v712_v34  ;;  %v1815_v40 = vpop.eup %1103 }
 0x1d3   :  { %v439_v39 = vsub.f32 %v1522_v13, %v1805_v32  ;;  %1115 = vpow2.f32 %v462_v0 }
 0x1d4   :  { %v714_v14 = vmul.f32 1.442695, %v685_v44  ;;  %v1817_v27 = vpop.eup %1105 }
 0x1d5   :  { %728 = vadd.xlane.f32.xlu0 %v1807_v59  ;;  %v669_v8 = vpop.xlane.xlu0 %668  ;;  %486 = vadd.xlane.f32.xlu1 %v1100_v33  ;;  %v464_v41 = vmul.f32 1.442695, %v439_v39  ;;  %v1108_v53 = vpop.eup %1107 }
 0x1d6   :  { %v686_v25 = vsub.f32 %v1616_v47, %v669_v8  ;;  %v1813_v12 = vpop.xlane.xlu1 %412  ;;  %1117 = vpow2.f32 %v714_v14 }
 0x1d7   :  { %v437_v23 = vsub.f32 %v1646_v57, %v1813_v12  ;;  %1119 = vpow2.f32 %v464_v41 }
 0x1d8   :  { %v716_v54 = vmul.f32 1.442695, %v686_v25  ;;  %v1826_v18 = vpop.eup %1109 }
 0x1d9   :  { %732 = vadd.xlane.f32.xlu0 %v1817_v27  ;;  %v671_v13 = vpop.xlane.xlu0 %670  ;;  %730 = vadd.xlane.f32.xlu1 %v1815_v40  ;;  %v460_v49 = vmul.f32 1.442695, %v437_v23  ;;  %v1112_v0 = vpop.eup %1111 }
 0x1da   :  { %v687_v47 = vsub.f32 %v1638_v55, %v671_v13  ;;  %v1824_v43 = vpop.xlane.xlu1 %418  ;;  %1121 = vpow2.f32 %v716_v54 }
 0x1db   :  { %v440_v34 = vsub.f32 %v1545_v21, %v1824_v43  ;;  %1123 = vpow2.f32 %v460_v49 }
 0x1dc   :  { %v718_v44 = vmul.f32 1.442695, %v687_v47  ;;  %v1837_v39 = vpop.eup %1113 }
 0x1dd   :  { %734 = vadd.xlane.f32.xlu0 %v1826_v18  ;;  %v1831_v57 = vpop.xlane.xlu0 %422  ;;  %488 = vadd.xlane.f32.xlu1 %v1108_v53  ;;  %v466_v8 = vmul.f32 1.442695, %v440_v34  ;;  %v1116_v23 = vpop.eup %1115 }
 0x1de   :  { %v442_v55 = vsub.f32 %v1583_v35, %v1831_v57  ;;  %v1835_v33 = vpop.xlane.xlu1 %420  ;;  %1125 = vpow2.f32 %v718_v44 }
 0x1df   :  { %v441_v21 = vsub.f32 %v1564_v28, %v1835_v33  ;;  %1127 = vpow2.f32 %v466_v8 }
 0x1e0   :  { %v470_v25 = vmul.f32 1.442695, %v442_v55  ;;  %v1848_v13 = vpop.eup %1117 }
 0x1e1   :  { %744 = vadd.xlane.f32.xlu0 %v1837_v39  ;;  %v1842_v14 = vpop.xlane.xlu0 %426  ;;  %490 = vadd.xlane.f32.xlu1 %v1112_v0  ;;  %v468_v54 = vmul.f32 1.442695, %v441_v21  ;;  %v1120_v53 = vpop.eup %1119 }
 0x1e2   :  { %v444_v35 = vsub.f32 %v1624_v50, %v1842_v14  ;;  %v1846_v41 = vpop.xlane.xlu1 %424  ;;  %1129 = vpow2.f32 %v470_v25 }
 0x1e3   :  { %v443_v47 = vsub.f32 %v1602_v42, %v1846_v41  ;;  %1131 = vpow2.f32 %v468_v54 }
 0x1e4   :  { %v474_v28 = vmul.f32 1.442695, %v444_v35  ;;  %v1855_v34 = vpop.eup %1121 }
 0x1e5   :  { %746 = vadd.xlane.f32.xlu0 %v1848_v13  ;;  %494 = vadd.xlane.f32.xlu1 %v1116_v23  ;;  %v472_v50 = vmul.f32 1.442695, %v443_v47  ;;  %v1124_v55 = vpop.eup %1123 }
 0x1e6   :  { %v1853_v49 = vpop.xlane.xlu1 %428  ;;  %1133 = vpow2.f32 %v474_v28 }
 0x1e7   :  { %1980 = vst [vmem:[#allocation6_spill] sm:$0xff] %v1853_v49  ;;  %v445_v44 = vsub.f32 %v1648_v58, %v1853_v49  ;;  %1135 = vpow2.f32 %v472_v50 }
 0x1e8   :  { %v1860_v0 = vpop.eup %1125 }
 0x1e9   :  { %748 = vadd.xlane.f32.xlu0 %v1855_v34  ;;  %496 = vadd.xlane.f32.xlu1 %v1120_v53  ;;  %v476_v42 = vmul.f32 1.442695, %v445_v44  ;;  %v1128_v8 = vpop.eup %1127 }
 0x1eb   :  { %1137 = vpow2.f32 %v476_v42 }
 0x1ec   :  { %v1130_v21 = vpop.eup %1129 }
 0x1ed   :  { %750 = vadd.xlane.f32.xlu0 %v1860_v0  ;;  %492 = vadd.xlane.f32.xlu1 %v1124_v55  ;;  %v1132_v25 = vpop.eup %1131 }
 0x1f0   :  { %v1134_v35 = vpop.eup %1133 }
 0x1f1   :  { %502 = vadd.xlane.f32.xlu0 %v1130_v21  ;;  %498 = vadd.xlane.f32.xlu1 %v1128_v8  ;;  %v1136_v23 = vpop.eup %1135 }
 0x1f5   :  { %506 = vadd.xlane.f32.xlu0 %v1134_v35  ;;  %500 = vadd.xlane.f32.xlu1 %v1132_v25  ;;  %v1138_v58 = vpop.eup %1137 }
 0x1f9   :  { %504 = vadd.xlane.f32.xlu1 %v1136_v23  ;;  %589 = vadd.xlane.f32.xlu0 %v1724_v63 }
 0x1fd   :  { %508 = vadd.xlane.f32.xlu1 %v1138_v58 }
 0x242   :  { %v721_v54 = vpop.xlane.xlu0 %720 }
 0x243   :  { %1139 = vrcp.f32 %v721_v54 }
 0x246   :  { %v737_v28 = vpop.xlane.xlu0 %736 }
 0x24a   :  { %v479_v47 = vpop.xlane.xlu0 %478 }
 0x24d   :  { %v1140_v55 = vpop.eup %1139 }
 0x24e   :  { %v723_v53 = vpop.xlane.xlu1 %722  ;;  %v768_v21 = vmul.f32 %v1140_v55, %v1748_v6 }
 0x24f   :  { %1141 = vrcp.f32 %v723_v53 }
 0x250   :  { %1143 = vrcp.f32 %v737_v28  ;;  %v784_v23 = vsub.f32 1.0, %v768_v21 }
 0x252   :  { %v739_v50 = vpop.xlane.xlu0 %738  ;;  %v481_v44 = vpop.xlane.xlu1 %480 }
 0x256   :  { %v725_v42 = vpop.xlane.xlu0 %724  ;;  %v483_v8 = vpop.xlane.xlu1 %482 }
 0x257   :  { %1145 = vrcp.f32 %v725_v42 }
 0x258   :  { %1147 = vrcp.f32 %v739_v50 }
 0x259   :  { %v1142_v25 = vpop.eup %1141 }
 0x25a   :  { %v741_v35 = vpop.xlane.xlu0 %740  ;;  %v727_v63 = vpop.xlane.xlu1 %726  ;;  %v769_v58 = vmul.f32 %v1142_v25, %v1767_v22 }
 0x25b   :  { %1149 = vrcp.f32 %v727_v63  ;;  %v1144_v54 = vpop.eup %1143 }
 0x25c   :  { %1151 = vlog2.f32 %v479_v47  ;;  %v785_v28 = vsub.f32 1.0, %v769_v58  ;;  %v776_v42 = vmul.f32 %v1144_v54, %v1755_v36 }
 0x25d   :  { %1153 = vrcp.f32 %v741_v35 }
 0x25e   :  { %v743_v53 = vpop.xlane.xlu0 %742  ;;  %v485_v29 = vpop.xlane.xlu1 %484  ;;  %1155 = vlog2.f32 %v784_v23  ;;  %v792_v21 = vsub.f32 1.0, %v776_v42 }
 0x25f   :  { %1157 = vlog2.f32 %v481_v44 }
 0x260   :  { %1159 = vlog2.f32 %v483_v8 }
 0x261   :  { %v1146_v49 = vpop.eup %1145 }
 0x262   :  { %v729_v6 = vpop.xlane.xlu0 %728  ;;  %v487_v55 = vpop.xlane.xlu1 %486  ;;  %v770_v50 = vmul.f32 %v1146_v49, %v1780_v11 }
 0x263   :  { %1161 = vrcp.f32 %v729_v6  ;;  %v1148_v22 = vpop.eup %1147 }
 0x264   :  { %1163 = vlog2.f32 %v785_v28  ;;  %v786_v63 = vsub.f32 1.0, %v770_v50  ;;  %v777_v44 = vmul.f32 %v1148_v22, %v1773_v51 }
 0x265   :  { %1165 = vrcp.f32 %v743_v53  ;;  %v1150_v47 = vpop.eup %1149 }
 0x266   :  { %1167 = vlog2.f32 %v485_v29  ;;  %v733_v25 = vpop.xlane.xlu0 %732  ;;  %v731_v35 = vpop.xlane.xlu1 %730  ;;  %v771_v23 = vmul.f32 %v1150_v47, %v1788_v46  ;;  %v793_v28 = vsub.f32 1.0, %v777_v44 }
 0x267   :  { %1169 = vrcp.f32 %v733_v25  ;;  %v1152_v36 = vpop.eup %1151 }
 0x268   :  { %1171 = vrcp.f32 %v731_v35  ;;  %v1154_v8 = vpop.eup %1153  ;;  %v787_v11 = vsub.f32 1.0, %v771_v23  ;;  %v511_v47 = vmul.f32 0.6931472, %v1152_v36 }
 0x269   :  { %1173 = vlog2.f32 %v792_v21  ;;  %v1156_v49 = vpop.eup %1155  ;;  %v778_v42 = vmul.f32 %v1154_v8, %v1790_v7 }
 0x26a   :  { %1175 = vlog2.f32 %v487_v55  ;;  %v735_v58 = vpop.xlane.xlu0 %734  ;;  %v489_v54 = vpop.xlane.xlu1 %488  ;;  %v542_v36 = vadd.f32 %v511_v47, %v1739_v37 }
 0x26b   :  { %v1158_v53 = vpop.eup %1157  ;;  %1177 = vlog2.f32 %v786_v63  ;;  %v794_v35 = vsub.f32 1.0, %v778_v42 }
 0x26c   :  { %v1160_v29 = vpop.eup %1159  ;;  %1179 = vrcp.f32 %v735_v58  ;;  %v513_v25 = vmul.f32 0.6931472, %v1158_v53 }
 0x26d   :  { %v1162_v46 = vpop.eup %1161  ;;  %1181 = vlog2.f32 %v787_v11 }
 0x26e   :  { %v1164_v6 = vpop.eup %1163  ;;  %v772_v51 = vmul.f32 %v1162_v46, %v1807_v59  ;;  %1183 = vlog2.f32 %v489_v54  ;;  %v745_v50 = vpop.xlane.xlu0 %744  ;;  %v515_v54 = vmul.f32 0.6931472, %v1160_v29  ;;  %v543_v46 = vadd.f32 %v513_v25, %v1737_v30 }
 0x26f   :  { %v491_v22 = vpop.xlane.xlu1 %490  ;;  %v1166_v21 = vpop.eup %1165  ;;  %1185 = vrcp.f32 %v745_v50  ;;  %v803_v42 = vmul.f32 0.6931472, %v1164_v6 }
 0x270   :  { %v1168_v55 = vpop.eup %1167  ;;  %1187 = vlog2.f32 %v793_v28  ;;  %v788_v63 = vsub.f32 1.0, %v772_v51  ;;  %v779_v44 = vmul.f32 %v1166_v21, %v1799_v26  ;;  %v801_v21 = vmul.f32 0.6931472, %v1156_v49 }
 0x271   :  { %v1170_v23 = vpop.eup %1169  ;;  %1189 = vlog2.f32 %v491_v22  ;;  %v517_v26 = vmul.f32 0.6931472, %v1168_v55  ;;  %v544_v47 = vadd.f32 %v515_v54, %v1746_v60  ;;  %v833_v55 = vsel %vm383_vm3, 0.0, %v803_v42 }
 0x272   :  { %v1172_v7 = vpop.eup %1171  ;;  %1191 = vlog2.f32 %v788_v63  ;;  %v774_v59 = vmul.f32 %v1170_v23, %v1817_v27  ;;  %v747_v8 = vpop.xlane.xlu0 %746  ;;  %v795_v63 = vsub.f32 1.0, %v779_v44  ;;  %v600_v25 = vsel %vm598_vm1, %v543_v46, 0.0 }
 0x273   :  { %v495_v11 = vpop.xlane.xlu1 %494  ;;  %v1174_v58 = vpop.eup %1173  ;;  %v773_v28 = vmul.f32 %v1172_v7, %v1815_v40  ;;  %1193 = vrcp.f32 %v747_v8  ;;  %v599_v40 = vsel %vm598_vm1, %v542_v36, 0.0  ;;  %v545_v7 = vadd.f32 %v517_v26, %v1760_v5 }
 0x274   :  { %v1176_v53 = vpop.eup %1175  ;;  %1195 = vlog2.f32 %v794_v35  ;;  %v790_v51 = vsub.f32 1.0, %v774_v59  ;;  %v832_v60 = vsel %vm382_vm2, 0.0, %v801_v21  ;;  %v601_v42 = vadd.f32 %v600_v25, %v599_v40 }
 0x275   :  { %v1178_v50 = vpop.eup %1177  ;;  %v789_v22 = vsub.f32 1.0, %v773_v28  ;;  %1197 = vlog2.f32 %v495_v11  ;;  %v519_v44 = vmul.f32 0.6931472, %v1176_v53  ;;  %v817_v28 = vmul.f32 0.6931472, %v1174_v58 }
 0x276   :  { %v1180_v27 = vpop.eup %1179  ;;  %1199 = vlog2.f32 %v790_v51  ;;  %v749_v23 = vpop.xlane.xlu0 %748  ;;  %v805_v49 = vmul.f32 0.6931472, %v1178_v50  ;;  %v602_v46 = vsel %vm598_vm1, %v544_v47, 0.0  ;;  %v848_v53 = vadd.f32 %v833_v55, %v832_v60 }
 0x277   :  { %v497_v37 = vpop.xlane.xlu1 %496  ;;  %v1182_v29 = vpop.eup %1181  ;;  %1201 = vlog2.f32 %v789_v22  ;;  %v775_v30 = vmul.f32 %v1180_v27, %v1826_v18  ;;  %v604_v26 = vsel %vm598_vm1, %v545_v7, 0.0  ;;  %v546_v22 = vadd.f32 %v519_v44, %v1765_v15 }
 0x278   :  { %v1184_v6 = vpop.eup %1183  ;;  %1203 = vrcp.f32 %v749_v23  ;;  %v807_v18 = vmul.f32 0.6931472, %v1182_v29  ;;  %v834_v51 = vsel %vm384_vm4, 0.0, %v805_v49  ;;  %v603_v47 = vadd.f32 %v602_v46, %v601_v42 }
 0x279   :  { %v1186_v35 = vpop.eup %1185  ;;  %v791_v59 = vsub.f32 1.0, %v775_v30  ;;  %1205 = vlog2.f32 %v497_v37  ;;  %v521_v2 = vmul.f32 0.6931472, %v1184_v6  ;;  %v849_v40 = vadd.f32 %v848_v53, %v834_v51 }
 0x27a   :  { %v1188_v8 = vpop.eup %1187  ;;  %1207 = vlog2.f32 %v795_v63  ;;  %v780_v4 = vmul.f32 %v1186_v35, %v1837_v39  ;;  %v751_v11 = vpop.xlane.xlu0 %750  ;;  %v835_v27 = vsel %vm385_vm5, 0.0, %v807_v18  ;;  %v605_v49 = vadd.f32 %v604_v26, %v603_v47 }
 0x27b   :  { %v493_v36 = vpop.xlane.xlu1 %492  ;;  %v1190_v54 = vpop.eup %1189  ;;  %1209 = vlog2.f32 %v791_v59  ;;  %v547_v6 = vadd.f32 %v521_v2, %v1778_v20  ;;  %v850_v25 = vadd.f32 %v849_v40, %v835_v27  ;;  %v840_v35 = vsel %vm390_vm10, 0.0, %v817_v28 }
 0x27c   :  { %v1192_v5 = vpop.eup %1191  ;;  %1211 = vrcp.f32 %v751_v11  ;;  %v796_v21 = vsub.f32 1.0, %v780_v4  ;;  %v523_v63 = vmul.f32 0.6931472, %v1190_v54  ;;  %v819_v4 = vmul.f32 0.6931472, %v1188_v8 }
 0x27d   :  { %v1194_v50 = vpop.eup %1193  ;;  %v809_v39 = vmul.f32 0.6931472, %v1192_v5  ;;  %1213 = vlog2.f32 %v493_v36  ;;  %v608_v28 = vsel %vm598_vm1, %v547_v6, 0.0 }
 0x27e   :  { %v1196_v58 = vpop.eup %1195  ;;  %v781_v23 = vmul.f32 %v1194_v50, %v1848_v13  ;;  %v503_v9 = vpop.xlane.xlu0 %502  ;;  %v606_v13 = vsel %vm598_vm1, %v546_v22, 0.0  ;;  %v548_v24 = vadd.f32 %v523_v63, %v1786_v19 }
 0x27f   :  { %v499_v37 = vpop.xlane.xlu1 %498  ;;  %v1198_v29 = vpop.eup %1197  ;;  %1215 = vlog2.f32 %v503_v9  ;;  %v836_v15 = vsel %vm386_vm6, 0.0, %v809_v39  ;;  %v607_v42 = vadd.f32 %v606_v13, %v605_v49  ;;  %v821_v40 = vmul.f32 0.6931472, %v1196_v58 }
 0x280   :  { %v1200_v30 = vpop.eup %1199  ;;  %1217 = vlog2.f32 %v499_v37  ;;  %v797_v17 = vsub.f32 1.0, %v781_v23  ;;  %v851_v11 = vadd.f32 %v850_v25, %v836_v15  ;;  %v527_v19 = vmul.f32 0.6931472, %v1198_v29 }
 0x281   :  { %v1202_v55 = vpop.eup %1201  ;;  %v813_v44 = vmul.f32 0.6931472, %v1200_v30  ;;  %1219 = vlog2.f32 %v796_v21  ;;  %v610_v2 = vsel %vm598_vm1, %v548_v24, 0.0  ;;  %v609_v23 = vadd.f32 %v608_v28, %v607_v42 }
 0x282   :  { %v1204_v7 = vpop.eup %1203  ;;  %v811_v59 = vmul.f32 0.6931472, %v1202_v55  ;;  %v507_v60 = vpop.xlane.xlu0 %506  ;;  %1221 = vlog2.f32 %v797_v17  ;;  %v550_v6 = vadd.f32 %v527_v19, %v1797_v10  ;;  %v841_v10 = vsel %vm391_vm11, 0.0, %v819_v4 }
 0x283   :  { %v501_v18 = vpop.xlane.xlu1 %500  ;;  %v1206_v20 = vpop.eup %1205  ;;  %v782_v36 = vmul.f32 %v1204_v7, %v1855_v34  ;;  %v838_v34 = vsel %vm388_vm8, 0.0, %v813_v44  ;;  %v611_v15 = vadd.f32 %v610_v2, %v609_v23 }
 0x284   :  { %v1208_v54 = vpop.eup %1207  ;;  %v837_v48 = vsel %vm387_vm7, 0.0, %v811_v59  ;;  %1223 = vlog2.f32 %v501_v18  ;;  %v529_v50 = vmul.f32 0.6931472, %v1206_v20  ;;  %v614_v18 = vsel %vm598_vm1, %v550_v6, 0.0  ;;  %v1982_v6 = vld [vmem:[#allocation5_spill] sm:$0xff] }
 0x285   :  { %v1210_v46 = vpop.eup %1209  ;;  %v852_v5 = vadd.f32 %v851_v11, %v837_v48  ;;  %1225 = vlog2.f32 %v507_v60  ;;  %v798_v53 = vsub.f32 1.0, %v782_v36  ;;  %v823_v55 = vmul.f32 0.6931472, %v1208_v54 }
 0x286   :  { %v1212_v51 = vpop.eup %1211  ;;  %v815_v8 = vmul.f32 0.6931472, %v1210_v46  ;;  %v590_v31 = vpop.xlane.xlu0 %589  ;;  %v551_v25 = vadd.f32 %v529_v50, %v1805_v32  ;;  %v842_v20 = vsel %vm392_vm12, 0.0, %v821_v40  ;;  %vm1983_vm2 = vcmp.eq.s32.totalorder %v1982_v6, %v1494_v3 }
 0x287   :  { %v505_v26 = vpop.xlane.xlu1 %504  ;;  %v1214_v39 = vpop.eup %1213  ;;  %v591_v22 = vrot.slane %v590_v31, 4  ;;  %v783_v27 = vmul.f32 %v1212_v51, %v1860_v0  ;;  %v853_v21 = vadd.f32 %v852_v5, %v838_v34  ;;  %v843_v4 = vsel %vm393_vm13, 0.0, %v823_v55 }
 0x288   :  { %1227 = vlog2.f32 %v505_v26  ;;  %v839_v63 = vsel %vm389_vm9, 0.0, %v815_v8  ;;  %v525_v9 = vmul.f32 0.6931472, %v1214_v39  ;;  %v616_v28 = vsel %vm598_vm1, %v551_v25, 0.0 }
 0x289   :  { %1229 = vlog2.f32 %v798_v53  ;;  %v1216_v38 = vpop.eup %1215  ;;  %v592_v37 = vadd.f32 %v591_v22, %v590_v31  ;;  %v799_v29 = vsub.f32 1.0, %v783_v27  ;;  %v854_v47 = vadd.f32 %v853_v21, %v839_v63 }
 0x28a   :  { %v1218_v30 = vpop.eup %1217  ;;  %v549_v17 = vadd.f32 %v525_v9, %v1813_v12  ;;  %v535_v44 = vmul.f32 0.6931472, %v1216_v38 }
 0x28b   :  { %v509_v0 = vpop.xlane.xlu1 %508  ;;  %v531_v45 = vmul.f32 0.6931472, %v1218_v30  ;;  %v593_v49 = vrot.slane %v592_v37, 2  ;;  %v1220_v13 = vpop.eup %1219  ;;  %v855_v58 = vadd.f32 %v854_v47, %v840_v35  ;;  %v1981_v30 = vld [vmem:[#allocation6_spill] sm:$0xff] }
 0x28c   :  { %1231 = vlog2.f32 %v509_v0  ;;  %v612_v7 = vsel %vm598_vm1, %v549_v17, 0.0  ;;  %v1222_v59 = vpop.eup %1221  ;;  %v825_v48 = vmul.f32 0.6931472, %v1220_v13  ;;  %v554_v52 = vadd.f32 %v535_v44, %v1831_v57 }
 0x28d   :  { %1233 = vlog2.f32 %v799_v29  ;;  %v613_v24 = vadd.f32 %v612_v7, %v611_v15  ;;  %v594_v60 = vadd.f32 %v593_v49, %v592_v37  ;;  %v552_v32 = vadd.f32 %v531_v45, %v1824_v43 }
 0x28e   :  { %v1224_v12 = vpop.eup %1223  ;;  %v856_v11 = vadd.f32 %v855_v58, %v841_v10  ;;  %v827_v53 = vmul.f32 0.6931472, %v1222_v59  ;;  %v844_v61 = vsel %vm394_vm14, 0.0, %v825_v48  ;;  %v622_v27 = vsel %vm598_vm1, %v554_v52, 0.0 }
 0x28f   :  { %v1226_v36 = vpop.eup %1225  ;;  %v615_v54 = vadd.f32 %v614_v18, %v613_v24  ;;  %v533_v35 = vmul.f32 0.6931472, %v1224_v12  ;;  %v595_v42 = vrot.slane %v594_v60, 1  ;;  %v618_v34 = vsel %vm598_vm1, %v552_v32, 0.0 }
 0x290   :  { %v857_v46 = vadd.f32 %v856_v11, %v842_v20  ;;  %v539_v8 = vmul.f32 0.6931472, %v1226_v36  ;;  %v845_v63 = vsel %vm395_vm15, 0.0, %v827_v53 }
 0x291   :  { %v617_v5 = vadd.f32 %v616_v28, %v615_v54  ;;  %v553_v56 = vadd.f32 %v533_v35, %v1835_v33  ;;  %v596_v19 = vadd.f32 %v595_v42, %v594_v60 }
 0x292   :  { %v1228_v43 = vpop.eup %1227  ;;  %v858_v50 = vadd.f32 %v857_v46, %v843_v4  ;;  %v556_v9 = vadd.f32 %v539_v8, %v1842_v14 }
 0x293   :  { %v1230_v51 = vpop.eup %1229  ;;  %v537_v2 = vmul.f32 0.6931472, %v1228_v43  ;;  %v619_v26 = vadd.f32 %v618_v34, %v617_v5  ;;  %v620_v57 = vsel %vm598_vm1, %v553_v56, 0.0  ;;  %1068 = vpush %v596_v19 }
 0x294   :  { %v829_v31 = vmul.f32 0.6931472, %v1230_v51  ;;  %v859_v33 = vadd.f32 %v858_v50, %v844_v61  ;;  %v626_v14 = vsel %vm598_vm1, %v556_v9, 0.0 }
 0x295   :  { %v555_v39 = vadd.f32 %v537_v2, %v1846_v41  ;;  %v621_v21 = vadd.f32 %v620_v57, %v619_v26 }
 0x296   :  { %v1232_v22 = vpop.eup %1231  ;;  %v860_v37 = vadd.f32 %v859_v33, %v845_v63  ;;  %v846_v41 = vsel %vm396_vm0, 0.0, %v829_v31 }
 0x297   :  { %v1234_v23 = vpop.eup %1233  ;;  %v541_v38 = vmul.f32 0.6931472, %v1232_v22  ;;  %v624_v29 = vsel %vm598_vm1, %v555_v39, 0.0  ;;  %v623_v40 = vadd.f32 %v622_v27, %v621_v21 }
 0x298   :  { %v831_v62 = vmul.f32 0.6931472, %v1234_v23  ;;  %v861_v47 = vadd.f32 %v860_v37, %v846_v41 }
 0x299   :  { %v557_v15 = vadd.f32 %v541_v38, %v1981_v30  ;;  %v625_v17 = vadd.f32 %v624_v29, %v623_v40 }
 0x29a   :  { %v847_v1 = vsel %vm1983_vm2, 0.0, %v831_v62 }
 0x29b   :  { %v862_v0 = vadd.f32 %v861_v47, %v847_v1  ;;  %v628_v55 = vsel %vm598_vm1, %v557_v15, 0.0  ;;  %v627_v25 = vadd.f32 %v626_v14, %v625_v17 }
 0x29d   :  { %863 = vadd.xlane.f32.xlu0 %v862_v0  ;;  %v629_v45 = vadd.f32 %v628_v55, %v627_v25 }
 0x29f   :  { %630 = vadd.xlane.f32.xlu1 %v629_v45 }
 0x2c4   :  { %s1069_s0 = spop %1068 }
 0x32a   :  { %v864_v16 = vpop.xlane.xlu0 %863 }
 0x32b   :  { %v865_v49 = vrot.slane %v864_v16, 4 }
 0x32c   :  { %v631_v7 = vpop.xlane.xlu1 %630 }
 0x32d   :  { %v866_v13 = vadd.f32 %v865_v49, %v864_v16  ;;  %v632_v44 = vrot.slane %v631_v7, 4 }
 0x32f   :  { %v867_v58 = vrot.slane %v866_v13, 2  ;;  %v633_v59 = vadd.f32 %v632_v44, %v631_v7 }
 0x331   :  { %v868_v24 = vadd.f32 %v867_v58, %v866_v13  ;;  %v634_v3 = vrot.slane %v633_v59, 2 }
 0x333   :  { %v635_v60 = vadd.f32 %v634_v3, %v633_v59  ;;  %v869_v10 = vrot.slane %v868_v24, 1 }
 0x335   :  { %v636_v12 = vrot.slane %v635_v60, 1  ;;  %v870_v32 = vadd.f32 %v869_v10, %v868_v24 }
 0x337   :  { %v637_v18 = vadd.f32 %v636_v12, %v635_v60 }
 0x339   :  { %1070 = vpush %v637_v18 }
 0x33a   :  { %1072 = vpush %v870_v32 }
 0x36a   :  { %s1071_s12 = spop %1070 }
 0x36b   :  { %s639_s13 = ssub.f32 %s1069_s0, %s1071_s12  ;;  %s1073_s15 = spop %1072 }
 0x36d   :  { %s872_s14 = ssub.f32 0.0, %s639_s13 }
 0x36f   :  { %s873_s16 = ssub.f32 %s872_s14, %s1073_s15 }
 0x371   :  { %s876_s17 = smul.f32 0.0078125, %s873_s16 }
 0x373   :  { %878 = sst [smem:[#allocation2]] %s876_s17 }
 0x374   :  { %1244 = shalt.err (!%p1241_p2)
}
 0x375   :  { %s1247_s25 = smov [#allocation2]  }
 0x376   :  { %886 = dma.smem_to_hbm %s1247_s25, 16, %s1973_s1, [#allocation3]  }
 0x377   :  { %1245 = dma.done.wait [#allocation3], 16  }
 0x378   :  { %1246 = vsyncadd [#allocation3], 4294967280 }
 0x379   :  { %890 = sfence }
 0x37a   :  { %891 = vsyncpa [#allocation3], 1 }

</bundles_post_ra>
